<compile_context>
chip_gen: v7x
topology: tpu7x:2x2x1
jax: 0.10.0
libtpu: 0.0.40
codegen_flags: <defaults>
</compile_context>

<pallas_src>
import functools

import jax
import jax.numpy as jnp
from jax import lax
from jax.experimental import pallas as pl
from jax.experimental.pallas import tpu as pltpu


# ----------------------------------------------------------------------------
# Fused Pallas kernel: im2col-in-VMEM + one MXU matmul + bias
# ----------------------------------------------------------------------------
def _sepconv_kernel(x_ref, w2_ref, b_ref, o_ref, col_ref, *, Wp):
    """One image per grid step.

    x_ref  : (1, Cin, Hp*Wp)   bf16  zero-padded image, channels on sublanes,
                                     flattened padded spatial on lanes
    w2_ref : (Cout, 9*Cin)     bf16  folded depthwise*pointwise weight,
                                     row index = k*Cin + ci, k = ky*3 + kx
    b_ref  : (Cout, 1)         f32   bias
    o_ref  : (1, Cout, H*Wp)   f32   lane-dense output (2 junk cols per row)
    col_ref: (9*Cin, H*Wp)     bf16  VMEM scratch: im2col tile
    """
    Cin = x_ref.shape[1]
    L = o_ref.shape[2]  # H * Wp

    # Build the im2col tile: 9 contiguous lane-offset slices of the padded
    # image (offset = ky*Wp + kx).  Pure copies, no VPU MACs, no converts.
    for k in range(9):
        ky, kx = k // 3, k % 3
        off = ky * Wp + kx
        col_ref[pl.ds(k * Cin, Cin), :] = x_ref[0, :, pl.ds(off, L)]

    # One MXU matmul: (Cout, 9*Cin) . (9*Cin, L) -> (Cout, L), f32 accumulate.
    out = lax.dot_general(
        w2_ref[...], col_ref[...],
        dimension_numbers=(((1,), (0,)), ((), ())),
        preferred_element_type=jnp.float32,
    )
    o_ref[0] = (out + b_ref[...]).astype(o_ref.dtype)


# ----------------------------------------------------------------------------
# Wrapper (layout glue only)
# ----------------------------------------------------------------------------
def separable_conv2d(x_nchw, w_dw, w_pw, bias):
    """x:(N,Cin,H,W) f32, w_dw:(Cin,1,3,3), w_pw:(Cout,Cin,1,1), bias:(Cout,)
    -> (N,Cout,H,W) f32, matching SeparableConv2d.forward semantics."""
    N, Cin, H, W = x_nchw.shape
    Cout = w_pw.shape[0]
    Wp = W + 2          # padded width (1 left + 1 right)
    Hp = H + 3          # 1 top + 2 bottom zero rows: the extra row keeps the
                        # flat lane-offset taps in bounds for the last output row
    L = H * Wp          # flattened output length per image (incl. 2 junk cols/row)
    Sp = Hp * Wp

    # Zero-pad and flatten spatial: (N, Cin, Hp*Wp), bf16 for the MXU.
    xp = jnp.pad(x_nchw, ((0, 0), (0, 0), (1, 2), (1, 1)))
    xflat = xp.reshape(N, Cin, Sp).astype(jnp.bfloat16)

    # Fold depthwise into pointwise: W2[co, k*Cin+ci] = w_pw[co,ci]*w_dw[ci,0,ky,kx]
    wdw_taps = jnp.transpose(w_dw[:, 0, :, :].reshape(Cin, 9), (1, 0))      # (9, Cin)
    w2 = (w_pw[:, :, 0, 0][:, None, :] * wdw_taps[None, :, :])              # (Cout, 9, Cin)
    w2 = w2.reshape(Cout, 9 * Cin).astype(jnp.bfloat16)
    b2 = bias.reshape(Cout, 1).astype(jnp.float32)

    out = pl.pallas_call(
        functools.partial(_sepconv_kernel, Wp=Wp),
        out_shape=jax.ShapeDtypeStruct((N, Cout, L), jnp.float32),
        grid=(N,),
        in_specs=[
            pl.BlockSpec((1, Cin, Sp), lambda b: (b, 0, 0)),
            pl.BlockSpec((Cout, 9 * Cin), lambda b: (0, 0)),
            pl.BlockSpec((Cout, 1), lambda b: (0, 0)),
        ],
        out_specs=pl.BlockSpec((1, Cout, L), lambda b: (b, 0, 0)),
        scratch_shapes=[pltpu.VMEM((9 * Cin, L), jnp.bfloat16)],
        compiler_params=pltpu.CompilerParams(dimension_semantics=("parallel",)),
    )(xflat, w2, b2)

    # Drop the 2 junk columns per row introduced by the flat lane-offset taps.
    return out.reshape(N, Cout, H, Wp)[:, :, :, :W]


# ----------------------------------------------------------------------------
# Pure-JAX reference.  The fused kernel is mathematically a dense 3x3 conv
# with weight Wfull[co,ci,ky,kx] = w_pw[co,ci]*w_dw[ci,0,ky,kx]; the reference
# applies the SAME bf16 quantization to x and Wfull and otherwise computes in
# f32 (HIGHEST), so remaining diffs are f32 accumulation order only.
# ----------------------------------------------------------------------------
def ref_separable_conv2d(x_nchw, w_dw, w_pw, bias):
    w_full = w_pw[:, :, 0, 0][:, :, None, None] * w_dw[:, 0][None, :, :, :]
    xq = x_nchw.astype(jnp.bfloat16).astype(jnp.float32)
    wq = w_full.astype(jnp.bfloat16).astype(jnp.float32)
    out = lax.conv_general_dilated(
        xq, wq, (1, 1), [(1, 1), (1, 1)],
        dimension_numbers=("NCHW", "OIHW", "NCHW"),
        precision=lax.Precision.HIGHEST)
    return out + bias.reshape(1, -1, 1, 1)


# ----------------------------------------------------------------------------
# Main
# ----------------------------------------------------------------------------
if __name__ == "__main__":
    N, Cin, Cout, H, W = 2, 16, 32, 16, 16

    key = jax.random.PRNGKey(0)
    key, kx, kd, kp, kb = jax.random.split(key, 5)

    # Deterministic inputs / parameters (shapes as in the nn.Module __init__).
    x = jax.random.normal(kx, (N, Cin, H, W), jnp.float32)
    w_dw = jax.random.normal(kd, (Cin, 1, 3, 3), jnp.float32) * (1.0 / 3.0)
    w_pw = jax.random.normal(kp, (Cout, Cin, 1, 1), jnp.float32) * (1.0 / (Cin ** 0.5))
    bias = jax.random.normal(kb, (Cout,), jnp.float32) * 0.1

    fwd = jax.jit(separable_conv2d)
    out = fwd(x, w_dw, w_pw, bias)
    jax.block_until_ready(out)

    ref = ref_separable_conv2d(x, w_dw, w_pw, bias)
    assert out.shape == ref.shape == (N, Cout, H, W), (out.shape, ref.shape)
    # bf16-in / f32-accumulate MXU numerics with matched quantization in the
    # reference; residual diffs are accumulation order only.
    assert jnp.allclose(out, ref, rtol=1e-2, atol=1e-2), \
        float(jnp.max(jnp.abs(out - ref)))

    print("KERNEL_OK")
</pallas_src>

<mosaic_0001>
module attributes {stable_mosaic.version = 11 : i64} {
  func.func @_sepconv_kernel(%arg0: i32, %arg1: memref<1x16x342xbf16, #tpu.memory_space<vmem>>, %arg2: memref<32x144xbf16, #tpu.memory_space<vmem>>, %arg3: memref<32x1xf32, #tpu.memory_space<vmem>>, %arg4: memref<1x32x288xf32, #tpu.memory_space<vmem>>, %arg5: memref<144x288xbf16, #tpu.memory_space<vmem>>) attributes {dimension_semantics = [#tpu.dimension_semantics<parallel>], iteration_bounds = array<i64: 2>, scalar_prefetch = 0 : i64, scratch_operands = 1 : i64, tpu.core_type = #tpu.core_type<tc>, window_params = [{transform_indices = @transform_0, window_bounds = array<i64: 1, 16, 342>}, {pipeline_mode = #tpu.pipeline_mode<synchronous>, transform_indices = @transform_1, window_bounds = array<i64: 32, 144>}, {pipeline_mode = #tpu.pipeline_mode<synchronous>, transform_indices = @transform_2, window_bounds = array<i64: 32, 1>}, {transform_indices = @transform_3, window_bounds = array<i64: 1, 32, 288>}]} {
    %c0 = arith.constant 0 : index
    %c0_0 = arith.constant 0 : index
    %c0_1 = arith.constant 0 : index
    %0 = vector.load %arg1[%c0, %c0_0, %c0_1] : memref<1x16x342xbf16, #tpu.memory_space<vmem>>, vector<1x16x288xbf16>
    %1 = vector.shape_cast %0 : vector<1x16x288xbf16> to vector<16x288xbf16>
    %c0_2 = arith.constant 0 : index
    %c0_3 = arith.constant 0 : index
    %2 = vector.load %arg5[%c0_2, %c0_3] : memref<144x288xbf16, #tpu.memory_space<vmem>>, vector<16x288xbf16>
    tpu.vector_store %arg5[%c0_2, %c0_3], %1 {strides = array<i32>} : memref<144x288xbf16, #tpu.memory_space<vmem>>, vector<16x288xbf16>,
    %c0_4 = arith.constant 0 : index
    %c0_5 = arith.constant 0 : index
    %c1 = arith.constant 1 : index
    %3 = vector.load %arg1[%c0_4, %c0_5, %c1] : memref<1x16x342xbf16, #tpu.memory_space<vmem>>, vector<1x16x288xbf16>
    %4 = vector.shape_cast %3 : vector<1x16x288xbf16> to vector<16x288xbf16>
    %c16 = arith.constant 16 : index
    %c0_6 = arith.constant 0 : index
    %5 = vector.load %arg5[%c16, %c0_6] : memref<144x288xbf16, #tpu.memory_space<vmem>>, vector<16x288xbf16>
    tpu.vector_store %arg5[%c16, %c0_6], %4 {strides = array<i32>} : memref<144x288xbf16, #tpu.memory_space<vmem>>, vector<16x288xbf16>,
    %c0_7 = arith.constant 0 : index
    %c0_8 = arith.constant 0 : index
    %c2 = arith.constant 2 : index
    %6 = vector.load %arg1[%c0_7, %c0_8, %c2] : memref<1x16x342xbf16, #tpu.memory_space<vmem>>, vector<1x16x288xbf16>
    %7 = vector.shape_cast %6 : vector<1x16x288xbf16> to vector<16x288xbf16>
    %c32 = arith.constant 32 : index
    %c0_9 = arith.constant 0 : index
    %8 = vector.load %arg5[%c32, %c0_9] : memref<144x288xbf16, #tpu.memory_space<vmem>>, vector<16x288xbf16>
    tpu.vector_store %arg5[%c32, %c0_9], %7 {strides = array<i32>} : memref<144x288xbf16, #tpu.memory_space<vmem>>, vector<16x288xbf16>,
    %c0_10 = arith.constant 0 : index
    %c0_11 = arith.constant 0 : index
    %c18 = arith.constant 18 : index
    %9 = vector.load %arg1[%c0_10, %c0_11, %c18] : memref<1x16x342xbf16, #tpu.memory_space<vmem>>, vector<1x16x288xbf16>
    %10 = vector.shape_cast %9 : vector<1x16x288xbf16> to vector<16x288xbf16>
    %c48 = arith.constant 48 : index
    %c0_12 = arith.constant 0 : index
    %11 = vector.load %arg5[%c48, %c0_12] : memref<144x288xbf16, #tpu.memory_space<vmem>>, vector<16x288xbf16>
    tpu.vector_store %arg5[%c48, %c0_12], %10 {strides = array<i32>} : memref<144x288xbf16, #tpu.memory_space<vmem>>, vector<16x288xbf16>,
    %c0_13 = arith.constant 0 : index
    %c0_14 = arith.constant 0 : index
    %c19 = arith.constant 19 : index
    %12 = vector.load %arg1[%c0_13, %c0_14, %c19] : memref<1x16x342xbf16, #tpu.memory_space<vmem>>, vector<1x16x288xbf16>
    %13 = vector.shape_cast %12 : vector<1x16x288xbf16> to vector<16x288xbf16>
    %c64 = arith.constant 64 : index
    %c0_15 = arith.constant 0 : index
    %14 = vector.load %arg5[%c64, %c0_15] : memref<144x288xbf16, #tpu.memory_space<vmem>>, vector<16x288xbf16>
    tpu.vector_store %arg5[%c64, %c0_15], %13 {strides = array<i32>} : memref<144x288xbf16, #tpu.memory_space<vmem>>, vector<16x288xbf16>,
    %c0_16 = arith.constant 0 : index
    %c0_17 = arith.constant 0 : index
    %c20 = arith.constant 20 : index
    %15 = vector.load %arg1[%c0_16, %c0_17, %c20] : memref<1x16x342xbf16, #tpu.memory_space<vmem>>, vector<1x16x288xbf16>
    %16 = vector.shape_cast %15 : vector<1x16x288xbf16> to vector<16x288xbf16>
    %c80 = arith.constant 80 : index
    %c0_18 = arith.constant 0 : index
    %17 = vector.load %arg5[%c80, %c0_18] : memref<144x288xbf16, #tpu.memory_space<vmem>>, vector<16x288xbf16>
    tpu.vector_store %arg5[%c80, %c0_18], %16 {strides = array<i32>} : memref<144x288xbf16, #tpu.memory_space<vmem>>, vector<16x288xbf16>,
    %c0_19 = arith.constant 0 : index
    %c0_20 = arith.constant 0 : index
    %c36 = arith.constant 36 : index
    %18 = vector.load %arg1[%c0_19, %c0_20, %c36] : memref<1x16x342xbf16, #tpu.memory_space<vmem>>, vector<1x16x288xbf16>
    %19 = vector.shape_cast %18 : vector<1x16x288xbf16> to vector<16x288xbf16>
    %c96 = arith.constant 96 : index
    %c0_21 = arith.constant 0 : index
    %20 = vector.load %arg5[%c96, %c0_21] : memref<144x288xbf16, #tpu.memory_space<vmem>>, vector<16x288xbf16>
    tpu.vector_store %arg5[%c96, %c0_21], %19 {strides = array<i32>} : memref<144x288xbf16, #tpu.memory_space<vmem>>, vector<16x288xbf16>,
    %c0_22 = arith.constant 0 : index
    %c0_23 = arith.constant 0 : index
    %c37 = arith.constant 37 : index
    %21 = vector.load %arg1[%c0_22, %c0_23, %c37] : memref<1x16x342xbf16, #tpu.memory_space<vmem>>, vector<1x16x288xbf16>
    %22 = vector.shape_cast %21 : vector<1x16x288xbf16> to vector<16x288xbf16>
    %c112 = arith.constant 112 : index
    %c0_24 = arith.constant 0 : index
    %23 = vector.load %arg5[%c112, %c0_24] : memref<144x288xbf16, #tpu.memory_space<vmem>>, vector<16x288xbf16>
    tpu.vector_store %arg5[%c112, %c0_24], %22 {strides = array<i32>} : memref<144x288xbf16, #tpu.memory_space<vmem>>, vector<16x288xbf16>,
    %c0_25 = arith.constant 0 : index
    %c0_26 = arith.constant 0 : index
    %c38 = arith.constant 38 : index
    %24 = vector.load %arg1[%c0_25, %c0_26, %c38] : memref<1x16x342xbf16, #tpu.memory_space<vmem>>, vector<1x16x288xbf16>
    %25 = vector.shape_cast %24 : vector<1x16x288xbf16> to vector<16x288xbf16>
    %c128 = arith.constant 128 : index
    %c0_27 = arith.constant 0 : index
    %26 = vector.load %arg5[%c128, %c0_27] : memref<144x288xbf16, #tpu.memory_space<vmem>>, vector<16x288xbf16>
    tpu.vector_store %arg5[%c128, %c0_27], %25 {strides = array<i32>} : memref<144x288xbf16, #tpu.memory_space<vmem>>, vector<16x288xbf16>,
    %c0_28 = arith.constant 0 : index
    %c0_29 = arith.constant 0 : index
    %27 = vector.load %arg2[%c0_28, %c0_29] : memref<32x144xbf16, #tpu.memory_space<vmem>>, vector<32x144xbf16>
    %c0_30 = arith.constant 0 : index
    %c0_31 = arith.constant 0 : index
    %28 = vector.load %arg5[%c0_30, %c0_31] : memref<144x288xbf16, #tpu.memory_space<vmem>>, vector<144x288xbf16>
    %cst = arith.constant dense<0.000000e+00> : vector<32x288xf32>
    %29 = tpu.matmul %27, %28, %cst {dimension_numbers = #tpu.dot_dimension_numbers<[1], [0], [0], [1], [0, 0, 1, 1], [], []>} : vector<32x144xbf16>, vector<144x288xbf16>, vector<32x288xf32> -> vector<32x288xf32>
    %c0_32 = arith.constant 0 : index
    %c0_33 = arith.constant 0 : index
    %30 = vector.load %arg3[%c0_32, %c0_33] : memref<32x1xf32, #tpu.memory_space<vmem>>, vector<32x1xf32>
    %31 = vector.broadcast %30 : vector<32x1xf32> to vector<32x288xf32>
    %32 = arith.addf %29, %31 : vector<32x288xf32>
    %c0_34 = arith.constant 0 : index
    %c0_35 = arith.constant 0 : index
    %c0_36 = arith.constant 0 : index
    %33 = vector.load %arg4[%c0_34, %c0_35, %c0_36] : memref<1x32x288xf32, #tpu.memory_space<vmem>>, vector<1x32x288xf32>
    %34 = vector.shape_cast %33 : vector<1x32x288xf32> to vector<32x288xf32>
    %35 = vector.shape_cast %32 : vector<32x288xf32> to vector<1x32x288xf32>
    tpu.vector_store %arg4[%c0_34, %c0_35, %c0_36], %35 {strides = array<i32>} : memref<1x32x288xf32, #tpu.memory_space<vmem>>, vector<1x32x288xf32>,
    return
  }
  func.func @transform_0(%arg0: i32) -> (i32, i32, i32) {
    %c0_i32 = arith.constant 0 : i32
    %c0_i32_0 = arith.constant 0 : i32
    %c0_i32_1 = arith.constant 0 : i32
    return %arg0, %c0_i32, %c0_i32_0 : i32, i32, i32
  }
  func.func @transform_1(%arg0: i32) -> (i32, i32) {
    %c0_i32 = arith.constant 0 : i32
    %c0_i32_0 = arith.constant 0 : i32
    %c0_i32_1 = arith.constant 0 : i32
    return %c0_i32, %c0_i32_0 : i32, i32
  }
  func.func @transform_2(%arg0: i32) -> (i32, i32) {
    %c0_i32 = arith.constant 0 : i32
    %c0_i32_0 = arith.constant 0 : i32
    %c0_i32_1 = arith.constant 0 : i32
    return %c0_i32, %c0_i32_0 : i32, i32
  }
  func.func @transform_3(%arg0: i32) -> (i32, i32, i32) {
    %c0_i32 = arith.constant 0 : i32
    %c0_i32_0 = arith.constant 0 : i32
    %c0_i32_1 = arith.constant 0 : i32
    return %arg0, %c0_i32, %c0_i32_0 : i32, i32, i32
  }
}

</mosaic_0001>

<bundles_post_ra>
// kernel: squeeze.2
= control target key start
LH: loop header
LB: loop body
LE: loop exit
PB: predicated region body
PF: predicated region fallthrough
CT: control target
= control target key end

     0   :  { %vm16_vm0 = vcmask 130048   ;;  %s61_s0 = inlined_call_operand.vmem [shape: f32[16,3,3], index: 0, kind: input, shape index: {}]   ;;  %s62_s1 = inlined_call_operand.vmem [shape: f32[16,9], index: 1, kind: output, shape index: {}]  }
   0x1   :  { %v29_v0 = vld [vmem:[%s61_s0 + $0x8] sm:$0xf]  ;;  %v30_v1 = vld [vmem:[%s61_s0 + $0x4] sm:$0xf]  ;;  %v13_v2 = vld [vmem:[%s61_s0] sm:$0xf] }
   0x2   :  { %8 = vst [vmem:[#allocation0 + $0x10] sm:$0xf] %v29_v0  ;;  %12 = vst [vmem:[#allocation0 + $0x8] sm:$0xf] %v30_v1 }
   0x3   :  { %14 = vst [vmem:[#allocation0] sm:$0xf] %v13_v2 }
   0x9   :  { %v19_v4 = vld [vmem:[#allocation0 + $0x8] sm:$0x7]   ;;  %v24_v5 = vld [vmem:[#allocation0 + $0x10] sm:$0x7]  }
   0xa   :  { %v15_v3 = vld [vmem:[#allocation0] sm:$0x7]   ;;  %31 = vst.msk [vmem:[%s62_s1 + $0x3] sm:$0x7] %vm16_vm0, %v19_v4   ;;  %32 = vst.msk [vmem:[%s62_s1 + $0x6] sm:$0x7] %vm16_vm0, %v24_v5  }
   0xb   :  { %17 = vst.msk [vmem:[%s62_s1] sm:$0x7] %vm16_vm0, %v15_v3  }

// kernel: separable_conv2d.1
= control target key start
LH: loop header
LB: loop body
LE: loop exit
PB: predicated region body
PF: predicated region fallthrough
CT: control target
= control target key end

     0   :  { %s821_s12 = smov 0   ;;  %s921_s0 = inlined_call_operand.vmem [shape: bf16[2,16,342], index: 0, kind: input, shape index: {}]   ;;  %s922_s1 = inlined_call_operand.vmem [shape: bf16[32,144], index: 1, kind: input, shape index: {}]   ;;  %s923_s2 = inlined_call_operand.vmem [shape: f32[32,1], index: 2, kind: input, shape index: {}]   ;;  %s924_s3 = inlined_call_operand.vmem [shape: f32[2,32,288], index: 3, kind: output, shape index: {}]  }
   0x1 LB: > { %s701_s13 = sadd.s32 4294967295, %s790_s12   ;;  %p705_p0 = scmp.ge.s32.totalorder %s790_s12, 1  ;;  %s790_s12 = sphi %s821_s12, %s13_s12  }
   0x2   : > { %p137_p1 = scmp.lt.s32.totalorder %s790_s12, 3 }
   0x4   : > { %p138_p2 = pnand %p705_p0, %p137_p1 }
   0x5   : > { %p161_p3 = scmp.lt.s32.totalorder (!%p138_p2), %s701_s13, 1  ;;  %v792_v0 = vmov (!%p138_p2), 0   ;;  %s793_s18 = smov (!%p138_p2), 127   ;;  %vm194_vm0 = vcmask (!%p138_p2), 261120   ;;  %v780_v12 = vld [vmem:[%s922_s1 + $0x4] ss:$8 sps:$4 sm:$0xff] (!%p138_p2)  }
   0x6   : > { %141 = sbr.rel (%p138_p2) target bundleno = 413 (0x19d), region = 32  ;;  %585 = vmatprep.subr.bf16.mxu1 (!%p138_p2), %v792_v0  ;;  %764 = vset.pattern.permute.xlu0 (!%p138_p2), %v792_v0  ;;  %s794_s19 = smov (!%p138_p2), 126   ;;  %vm525_vm1 = vcmask (!%p138_p2), 130048   ;;  %v483_v14 = vld [vmem:[%s923_s2] sm:$0xff] (!%p138_p2)  ;;  %v484_v15 = vld [vmem:[%s923_s2 + $0x8] sm:$0xff] (!%p138_p2)  ;;  %v486_v16 = vld [vmem:[%s923_s2 + $0x18] sm:$0xff] (!%p138_p2) }
   0x7   : > { %765 = vset.pattern.permute.xlu1 (!%p138_p2), %v792_v0  ;;  %s795_s20 = smov (!%p138_p2), 110   ;;  %s796_s21 = smov (!%p138_p2), 109   ;;  %741 = vmatprep.mubr.msk.bf16.mxu1 (!%p138_p2), %vm525_vm1, %v780_v12  ;;  %v485_v17 = vld [vmem:[%s923_s2 + $0x10] sm:$0xff] (!%p138_p2)  ;;  %vm219_vm2 = vcmask (!%p138_p2), 1039360   ;;  %vm251_vm3 = vcmask (!%p138_p2), 1031168   ;;  %vm283_vm4 = vcmask (!%p138_p2), 900096  }
   0x8   : > { %s797_s22 = smov (!%p138_p2), 108   ;;  %s798_s23 = smov (!%p138_p2), 92   ;;  %739 = vmatprep.mubr.msk.bf16.mxu0 (!%p138_p2), %vm525_vm1, %v780_v12  ;;  %vm315_vm5 = vcmask (!%p138_p2), 891904   ;;  %vm347_vm6 = vcmask (!%p138_p2), 883712   ;;  %vm379_vm7 = vcmask (!%p138_p2), 752640   ;;  %vm411_vm8 = vcmask (!%p138_p2), 744448  }
   0x9   : > { %s799_s26 = smov (!%p138_p2), 91   ;;  %s800_s27 = smov (!%p138_p2), 90   ;;  %vm443_vm9 = vcmask (!%p138_p2), 736256  }
   0xd   : > { %s926_s13 = smov (!%p161_p3, %s701_s13), 1 }
   0xe   : > { %s745_s14 = smul.u32 24, %s926_s13 }
  0x10   : > { %s838_s17 = scalar_lea.vmem %s921_s0, %s745_s14 }
  0x11   : > { %v766_v1 = vld [vmem:[%s838_s17 + $0x4] ss:$12 sps:$4 sm:$0xff]   ;;  %v768_v2 = vld [vmem:[%s838_s17] ss:$12 sps:$4 sm:$0xff]   ;;  %v769_v3 = vld [vmem:[%s838_s17 + $0x8] ss:$12 sps:$4 sm:$0xff]  }
  0x12   : > { %215 = vrot.lane.b32.xlu0 %v766_v1, %s793_s18  ;;  %532 = vmatprep.subr.bf16.mxu0 %v766_v1  ;;  %v770_v4 = vld [vmem:[%s838_s17 + $0x8] ss:$12 sps:$4 sm:$0xff]  }
  0x13   : > { %213 = vrot.lane.b32.xlu1 %v768_v2, %s793_s18  ;;  %533 = vmatpush1.bf16.msra.mxu0 %v768_v2  ;;  %v777_v5 = vld [vmem:[%s838_s17 + $0x8] ss:$12 sps:$4 sm:$0xff]  }
  0x14   : > { %v771_v6 = vld [vmem:[%s838_s17 + $0x8] ss:$12 sps:$4 sm:$0xff]   ;;  %195 = vst.msk [vmem:[#allocation2 + $0x10] sm:$0xff] %vm194_vm0, %v777_v5  ;;  %v783_v5 = vld [vmem:[%s922_s1 + $0x10] ss:$8 sps:$4 sm:$0xff]  }
  0x15   : > { %v772_v7 = vld [vmem:[%s838_s17 + $0x8] ss:$12 sps:$4 sm:$0xff]  }
  0x16   : > { %217 = vrot.lane.b32.xlu0 %v769_v3, %s793_s18  ;;  %v773_v9 = vld [vmem:[%s838_s17 + $0x8] ss:$12 sps:$4 sm:$0xff]  }
  0x17   : > { %247 = vrot.lane.b32.xlu1 %v766_v1, %s794_s19  ;;  %v774_v10 = vld [vmem:[%s838_s17 + $0x8] ss:$12 sps:$4 sm:$0xff]  }
  0x18   : > { %v775_v11 = vld [vmem:[%s838_s17 + $0x8] ss:$12 sps:$4 sm:$0xff]  }
  0x19   : > { %v776_v13 = vld [vmem:[%s838_s17 + $0x8] ss:$12 sps:$4 sm:$0xff]   ;;  %s746_s17 = smul.u32 96, %s926_s13 }
  0x1a   : > { %249 = vrot.lane.b32.xlu0 %v770_v4, %s794_s19  ;;  %v781_v3 = vld [vmem:[%s922_s1 + $0x14] ss:$8 sps:$4 sm:$0xff]  }
  0x1b   : > { %245 = vrot.lane.b32.xlu1 %v768_v2, %s794_s19  ;;  %v458_v8 = vld [vmem:[#allocation2 + $0x10] sm:$0xff] }
  0x1c   : > { %586 = vmatpush1.bf16.msra.mxu1 %v458_v8 }
  0x1d   : > { %587 = vmatprep.subr.bf16.mxu1 %v792_v0 }
  0x1e   : > { %279 = vrot.lane.b32.xlu0 %v766_v1, %s795_s20 }
  0x1f   : > { %281 = vrot.lane.b32.xlu1 %v771_v6, %s795_s20 }
  0x22   : > { %277 = vrot.lane.b32.xlu0 %v768_v2, %s795_s20  ;;  %s900_s20 = scalar_lea.vmem %s924_s3, %s746_s17 }
  0x23   : > { %311 = vrot.lane.b32.xlu1 %v766_v1, %s796_s21 }
  0x26   : > { %313 = vrot.lane.b32.xlu0 %v772_v7, %s796_s21 }
  0x27   : > { %309 = vrot.lane.b32.xlu1 %v768_v2, %s796_s21 }
  0x2a   : > { %343 = vrot.lane.b32.xlu0 %v766_v1, %s797_s22 }
  0x2b   : > { %345 = vrot.lane.b32.xlu1 %v773_v9, %s797_s22 }
  0x2e   : > { %341 = vrot.lane.b32.xlu0 %v768_v2, %s797_s22 }
  0x2f   : > { %375 = vrot.lane.b32.xlu1 %v766_v1, %s798_s23 }
  0x32   : > { %377 = vrot.lane.b32.xlu0 %v774_v10, %s798_s23 }
  0x33   : > { %373 = vrot.lane.b32.xlu1 %v768_v2, %s798_s23 }
  0x36   : > { %407 = vrot.lane.b32.xlu0 %v766_v1, %s799_s26 }
  0x37   : > { %409 = vrot.lane.b32.xlu1 %v775_v11, %s799_s26 }
  0x3a   : > { %405 = vrot.lane.b32.xlu0 %v768_v2, %s799_s26 }
  0x3b   : > { %439 = vrot.lane.b32.xlu1 %v766_v1, %s800_s27 }
  0x3e   : > { %441 = vrot.lane.b32.xlu0 %v776_v13, %s800_s27 }
  0x3f   : > { %437 = vrot.lane.b32.xlu1 %v768_v2, %s800_s27  ;;  %v778_v2 = vld [vmem:[%s922_s1] ss:$8 sps:$4 sm:$0xff]  }
  0x42   : > { %489 = vperm.xlu0 %764, %v483_v14  }
  0x43   : > { %494 = vperm.xlu1 %765, %v484_v15  }
  0x46   : > { %504 = vperm.xlu0 %764, %v486_v16  }
  0x47   : > { %499 = vperm.xlu1 %765, %v485_v17  }
  0x84   : > { %v216_v18 = vpop.permute.xlu0 %215 }
  0x85   : > { %v214_v19 = vpop.permute.xlu1 %213 }
  0x86   : > { %v220_v20 = vsel %vm219_vm2, %v214_v19, %v216_v18 }
  0x88   : > { %v218_v21 = vpop.permute.xlu0 %217 }
  0x89   : > { %v221_v22 = vsel %vm219_vm2, %v216_v18, %v218_v21  ;;  %227 = vst.msk [vmem:[#allocation2 + $0x28] sm:$0xff] %vm194_vm0, %v218_v21  ;;  %v248_v23 = vpop.permute.xlu1 %247 }
  0x8a   : > { %534 = vmatprep.subr.bf16.mxu0 %v221_v22 }
  0x8b   : > { %535 = vmatpush1.bf16.msra.mxu0 %v220_v20 }
  0x8c   : > { %v250_v24 = vpop.permute.xlu0 %249 }
  0x8d   : > { %v253_v25 = vsel %vm251_vm3, %v248_v23, %v250_v24  ;;  %259 = vst.msk [vmem:[#allocation2 + $0x40] sm:$0xff] %vm194_vm0, %v250_v24  ;;  %v246_v26 = vpop.permute.xlu1 %245 }
  0x8e   : > { %v252_v27 = vsel %vm251_vm3, %v246_v26, %v248_v23  ;;  %536 = vmatprep.subr.bf16.mxu0 %v253_v25 }
  0x8f   : > { %537 = vmatpush1.bf16.msra.mxu0 %v252_v27 }
  0x90   : > { %v280_v28 = vpop.permute.xlu0 %279  ;;  %v461_v29 = vld [vmem:[#allocation2 + $0x28] sm:$0xff] }
  0x91   : > { %v282_v30 = vpop.permute.xlu1 %281  ;;  %588 = vmatpush1.bf16.msra.mxu1 %v461_v29 }
  0x92   : > { %v285_v31 = vsel %vm283_vm4, %v280_v28, %v282_v30  ;;  %291 = vst.msk [vmem:[#allocation2 + $0x58] sm:$0xff] %vm194_vm0, %v282_v30  ;;  %589 = vmatprep.subr.bf16.mxu1 %v792_v0 }
  0x93   : > { %538 = vmatprep.subr.bf16.mxu0 %v285_v31 }
  0x94   : > { %v278_v32 = vpop.permute.xlu0 %277  ;;  %v464_v33 = vld [vmem:[#allocation2 + $0x40] sm:$0xff] }
  0x95   : > { %v284_v34 = vsel %vm283_vm4, %v278_v32, %v280_v28  ;;  %v312_v35 = vpop.permute.xlu1 %311  ;;  %590 = vmatpush1.bf16.msra.mxu1 %v464_v33 }
  0x96   : > { %591 = vmatprep.subr.bf16.mxu1 %v792_v0  ;;  %539 = vmatpush1.bf16.msra.mxu0 %v284_v34 }
  0x98   : > { %v314_v36 = vpop.permute.xlu0 %313 }
  0x99   : > { %v317_v37 = vsel %vm315_vm5, %v312_v35, %v314_v36  ;;  %323 = vst.msk [vmem:[#allocation2 + $0x70] sm:$0xff] %vm194_vm0, %v314_v36  ;;  %v310_v38 = vpop.permute.xlu1 %309  ;;  %v467_v39 = vld [vmem:[#allocation2 + $0x58] sm:$0xff] }
  0x9a   : > { %v316_v40 = vsel %vm315_vm5, %v310_v38, %v312_v35  ;;  %592 = vmatpush1.bf16.msra.mxu1 %v467_v39  ;;  %540 = vmatprep.subr.bf16.mxu0 %v317_v37 }
  0x9b   : > { %593 = vmatprep.subr.bf16.mxu1 %v792_v0  ;;  %541 = vmatpush1.bf16.msra.mxu0 %v316_v40 }
  0x9c   : > { %v344_v41 = vpop.permute.xlu0 %343 }
  0x9d   : > { %v346_v42 = vpop.permute.xlu1 %345 }
  0x9e   : > { %v349_v43 = vsel %vm347_vm6, %v344_v41, %v346_v42  ;;  %355 = vst.msk [vmem:[#allocation2 + $0x88] sm:$0xff] %vm194_vm0, %v346_v42 }
  0x9f   : > { %542 = vmatprep.subr.bf16.mxu0 %v349_v43 }
  0xa0   : > { %v342_v44 = vpop.permute.xlu0 %341  ;;  %v470_v45 = vld [vmem:[#allocation2 + $0x70] sm:$0xff] }
  0xa1   : > { %v348_v46 = vsel %vm347_vm6, %v342_v44, %v344_v41  ;;  %v376_v47 = vpop.permute.xlu1 %375  ;;  %594 = vmatpush1.bf16.msra.mxu1 %v470_v45 }
  0xa2   : > { %595 = vmatprep.subr.bf16.mxu1 %v792_v0  ;;  %543 = vmatpush1.bf16.msra.mxu0 %v348_v46 }
  0xa4   : > { %v378_v48 = vpop.permute.xlu0 %377 }
  0xa5   : > { %v381_v49 = vsel %vm379_vm7, %v376_v47, %v378_v48  ;;  %387 = vst.msk [vmem:[#allocation2 + $0xa0] sm:$0xff] %vm194_vm0, %v378_v48  ;;  %v374_v50 = vpop.permute.xlu1 %373  ;;  %v473_v51 = vld [vmem:[#allocation2 + $0x88] sm:$0xff] }
  0xa6   : > { %v380_v52 = vsel %vm379_vm7, %v374_v50, %v376_v47  ;;  %596 = vmatpush1.bf16.msra.mxu1 %v473_v51  ;;  %544 = vmatprep.subr.bf16.mxu0 %v381_v49 }
  0xa7   : > { %597 = vmatprep.subr.bf16.mxu1 %v792_v0  ;;  %545 = vmatpush1.bf16.msra.mxu0 %v380_v52 }
  0xa8   : > { %v408_v53 = vpop.permute.xlu0 %407 }
  0xa9   : > { %v410_v54 = vpop.permute.xlu1 %409 }
  0xaa   : > { %v413_v55 = vsel %vm411_vm8, %v408_v53, %v410_v54  ;;  %419 = vst.msk [vmem:[#allocation2 + $0xb8] sm:$0xff] %vm194_vm0, %v410_v54 }
  0xab   : > { %546 = vmatprep.subr.bf16.mxu0 %v413_v55 }
  0xac   : > { %v406_v56 = vpop.permute.xlu0 %405  ;;  %v476_v57 = vld [vmem:[#allocation2 + $0xa0] sm:$0xff] }
  0xad   : > { %v412_v58 = vsel %vm411_vm8, %v406_v56, %v408_v53  ;;  %v440_v59 = vpop.permute.xlu1 %439  ;;  %598 = vmatpush1.bf16.msra.mxu1 %v476_v57 }
  0xae   : > { %599 = vmatprep.subr.bf16.mxu1 %v792_v0  ;;  %547 = vmatpush1.bf16.msra.mxu0 %v412_v58 }
  0xb0   : > { %v442_v60 = vpop.permute.xlu0 %441 }
  0xb1   : > { %v445_v61 = vsel %vm443_vm9, %v440_v59, %v442_v60  ;;  %451 = vst.msk [vmem:[#allocation2 + $0xd0] sm:$0xff] %vm194_vm0, %v442_v60  ;;  %v438_v62 = vpop.permute.xlu1 %437  ;;  %v479_v63 = vld [vmem:[#allocation2 + $0xb8] sm:$0xff] }
  0xb2   : > { %v444_v1 = vsel %vm443_vm9, %v438_v62, %v440_v59  ;;  %600 = vmatpush1.bf16.msra.mxu1 %v479_v63  ;;  %548 = vmatprep.subr.bf16.mxu0 %v445_v61 }
  0xb3   : > { %601 = vmatprep.subr.bf16.mxu1 %v792_v0  ;;  %549 = vmatpush1.bf16.msra.mxu0 %v444_v1 }
  0xb6   : > { %565 = vmatmul.mubr.bf16.vlgmr.msra.gmra.mrb[0].mxu0 %v778_v2 }
  0xb7   : > { %740 = vmatprep.mubr.msk.bf16.mxu0 %vm525_vm1, %v781_v3 }
  0xb8   : > { %v482_v4 = vld [vmem:[#allocation2 + $0xd0] sm:$0xff] }
  0xb9   : > { %602 = vmatpush1.bf16.msra.mxu1 %v482_v4 }
  0xbc   : > { %618 = vmatmul.mubr.bf16.vlgmr.msra.gmra.mrb[0].mxu1 %v778_v2 }
  0xbd   : > { %742 = vmatprep.mubr.msk.bf16.mxu1 %vm525_vm1, %v781_v3 }
  0xbe   : > { %575 = vmatmul.mubr.bf16.gmra.mrb[4].mxu0 %v783_v5 }
  0xc1   : > { %v490_v0 = vpop.permute.xlu0 %489 }
  0xc2   : > { %v495_v7 = vpop.permute.xlu1 %494 }
  0xc4   : > { %626 = vmatmul.mubr.bf16.gmra.mrb[4].mxu1 %v783_v5 }
  0xc5   : > { %v505_v19 = vpop.permute.xlu0 %504 }
  0xc6   : > { %v500_v16 = vpop.permute.xlu1 %499 }
 0x189   : > { %v566_v6 = vpop.f32.mrb[0].mxu0 }
 0x18a   : > { %v567_v8 = vadd.f32 %v566_v6, %v490_v0  ;;  %v568_v9 = vpop.f32.mrb[1].mxu0 }
 0x18b   : > { %v569_v10 = vadd.f32 %v568_v9, %v490_v0  ;;  %v570_v11 = vpop.f32.mrb[2].mxu0 }
 0x18c   : > { %634 = vst [vmem:[%s900_s20] sm:$0xff] %v567_v8  ;;  %v571_v12 = vadd.f32 %v570_v11, %v495_v7  ;;  %v572_v13 = vpop.f32.mrb[3].mxu0 }
 0x18d   : > { %635 = vst [vmem:[%s900_s20 + $0x8] sm:$0xff] %v569_v10  ;;  %v573_v14 = vadd.f32 %v572_v13, %v495_v7 }
 0x18e   : > { %637 = vst [vmem:[%s900_s20 + $0x18] sm:$0xff] %v571_v12 }
 0x18f   : > { %v619_v15 = vpop.f32.mrb[0].mxu1  ;;  %638 = vst [vmem:[%s900_s20 + $0x20] sm:$0xff] %v573_v14 }
 0x190   : > { %v621_v17 = vpop.f32.mrb[1].mxu1  ;;  %v620_v18 = vadd.f32 %v619_v15, %v490_v0 }
 0x191   : > { %v622_v20 = vpop.f32.mrb[2].mxu1  ;;  %v576_v21 = vpop.f32.mrb[4].mxu0 }
 0x192   : > { %636 = vst.msk [vmem:[%s900_s20 + $0x10] sm:$0xff] %vm194_vm0, %v620_v18  ;;  %v623_v22 = vadd.f32 %v622_v20, %v495_v7  ;;  %v624_v23 = vpop.f32.mrb[3].mxu1  ;;  %v577_v24 = vadd.f32 %v576_v21, %v500_v16  ;;  %v578_v25 = vpop.f32.mrb[5].mxu0 }
 0x193   : > { %v579_v26 = vadd.f32 %v578_v25, %v500_v16  ;;  %v580_v27 = vpop.f32.mrb[6].mxu0 }
 0x194   : > { %639 = vst.msk [vmem:[%s900_s20 + $0x28] sm:$0xff] %vm194_vm0, %v623_v22  ;;  %640 = vst [vmem:[%s900_s20 + $0x30] sm:$0xff] %v577_v24  ;;  %v581_v28 = vadd.f32 %v580_v27, %v505_v19  ;;  %v582_v29 = vpop.f32.mrb[7].mxu0 }
 0x195   : > { %641 = vst [vmem:[%s900_s20 + $0x38] sm:$0xff] %v579_v26  ;;  %v583_v30 = vadd.f32 %v582_v29, %v505_v19 }
 0x196   : > { %643 = vst [vmem:[%s900_s20 + $0x48] sm:$0xff] %v581_v28 }
 0x197   : > { %v627_v31 = vpop.f32.mrb[4].mxu1  ;;  %644 = vst [vmem:[%s900_s20 + $0x50] sm:$0xff] %v583_v30 }
 0x198   : > { %v628_v32 = vadd.f32 %v627_v31, %v500_v16  ;;  %v629_v33 = vpop.f32.mrb[5].mxu1 }
 0x199   : > { %v630_v34 = vpop.f32.mrb[6].mxu1 }
 0x19a   : > { %642 = vst.msk [vmem:[%s900_s20 + $0x40] sm:$0xff] %vm194_vm0, %v628_v32  ;;  %v631_v35 = vadd.f32 %v630_v34, %v505_v19  ;;  %v632_v36 = vpop.f32.mrb[7].mxu1 }
 0x19c   : > { %645 = vst.msk [vmem:[%s900_s20 + $0x58] sm:$0xff] %vm194_vm0, %v631_v35 }
 0x19d PF: > { %s13_s12 = sadd.s32 1, %s790_s12  }
 0x19e   : > { %p10_p4 = scmp.ge.s32.totalorder %s13_s12, 4  }
 0x1a0   :  { %12 = sbr.rel (!%p10_p4) target bundleno = 1 (0x1), region = 62 }

</bundles_post_ra>
